<compile_context>
chip_gen: v7x
topology: tpu7x:2x2x1
jax: 0.10.0
libtpu: 0.0.40
codegen_flags: <defaults>
</compile_context>

<pallas_src>
import jax
import jax.numpy as jnp
from jax.experimental import pallas as pl
from jax.experimental.pallas import tpu as pltpu


# Per pipelined data buffer (x tile / out tile) budget in bytes. 2 MiB f32
# keeps 2x(in) + 2x(out) + 2x(param) ~ 8.5 MiB, inside v5e's 16 MiB scoped
# default and far under v6e/v7x limits, while sitting at ~85%+ of the
# elementwise HBM roofline per the measured tile-size sweep.
_VMEM_BUDGET_PER_BUF = 2 * 1024 * 1024
_TR_CAP = 1024   # row-tile cap (multiple of 8)


def _round_up(v, m):
    return ((v + m - 1) // m) * m


def _choose_tiles(R, L, itemsize):
    """Pick (TR, TL) honoring the (8, 128) rule and the VMEM budget."""
    max_elems = max(_VMEM_BUDGET_PER_BUF // itemsize, 8 * 128)
    tr_min = R if R <= 8 else 8

    # Option A: full-width rows -> each tile is one contiguous HBM transfer.
    if L * tr_min <= max_elems:
        TL = L
        if R <= 8:
            TR = R
        else:
            rows_fit = max((max_elems // L) // 8 * 8, 8)
            TR = min(rows_fit, _round_up(R, 8), _TR_CAP)
        return TR, TL

    # Option B: lane axis must be tiled. Prefer a TL (multiple of 128) that
    # divides L exactly so there is no ragged / masked edge block.
    tl_cap = max((max_elems // tr_min) // 128 * 128, 128)
    TL = None
    for cand in range(tl_cap, 127, -128):
        if L % cand == 0:
            TL = cand
            break
    if TL is None:
        TL = tl_cap
    if R <= 8:
        TR = R
    else:
        rows_fit = max((max_elems // TL) // 8 * 8, 8)
        TR = min(rows_fit, _round_up(R, 8), _TR_CAP)
    return TR, TL


def _residual_kernel(x_ref, p_ref, o_ref):
    # x_ref: (TR, TL) tile; p_ref: (TR, 2) f32 per-row (per-channel) params
    # with column 0 = w, column 1 = b.
    # Compute in f32 (v5e VPU/EUP have no native bf16 path), cast on store.
    x = x_ref[...].astype(jnp.float32)
    p = p_ref[...]
    w = p[:, 0:1]
    b = p[:, 1:2]
    fx = jnp.tanh(x * w + b)                      # fn(x)
    o_ref[...] = (fx + x).astype(o_ref.dtype)     # fn(x) + x  (Residual)


def _residual_forward(x_nchw, w_c, b_c):
    """x_nchw: (N, C, H, W); w_c, b_c: (C,) deterministic fn parameters."""
    N, C, H, W = x_nchw.shape
    R, L = N * C, H * W
    itemsize = jnp.dtype(x_nchw.dtype).itemsize

    x2d = x_nchw.reshape(R, L)
    # Per-row params folded into a single (R, 2) f32 slab (one DMA stream,
    # one padded VMEM buffer). Params stay f32 even for bf16 activations.
    w_row = jnp.broadcast_to(w_c[None, :].astype(jnp.float32), (N, C)).reshape(R)
    b_row = jnp.broadcast_to(b_c[None, :].astype(jnp.float32), (N, C)).reshape(R)
    p2d = jnp.stack([w_row, b_row], axis=-1)      # (R, 2) f32

    TR, TL = _choose_tiles(R, L, itemsize)

    # v7x: for sizeable slabs, make sure the (parallel) row axis has >= 2
    # blocks so both TensorCores get work (neutral on single-TC v5e/v6e).
    if R > 8 and pl.cdiv(R, TR) == 1 and pl.cdiv(L, TL) == 1 \
            and R * L * itemsize >= (512 * 1024):
        TR = min(TR, _round_up(pl.cdiv(R, 2), 8))

    grid = (pl.cdiv(R, TR), pl.cdiv(L, TL))

    # Explicit VMEM budget: double-buffered x + out tiles plus the (TR, 2)
    # param block (lane-padded to (TR, 128) f32), with 2x headroom.
    data_bytes = TR * TL * itemsize
    param_bytes = TR * 128 * 4
    vmem_needed = 4 * data_bytes + 2 * param_bytes
    vmem_limit = int(min(max(2 * vmem_needed, 16 * 1024 * 1024),
                         48 * 1024 * 1024))

    out2d = pl.pallas_call(
        _residual_kernel,
        out_shape=jax.ShapeDtypeStruct((R, L), x2d.dtype),
        grid=grid,
        in_specs=[
            pl.BlockSpec((TR, TL), lambda i, j: (i, j)),
            pl.BlockSpec((TR, 2), lambda i, j: (i, 0)),
        ],
        out_specs=pl.BlockSpec((TR, TL), lambda i, j: (i, j)),
        # Elementwise & independent per tile: both axes parallel so v7x's two
        # TensorCores can split the grid (neutral on 1-TC v5e/v6e).
        compiler_params=pltpu.CompilerParams(
            dimension_semantics=("parallel", "parallel"),
            vmem_limit_bytes=vmem_limit),
        # True in-place update: paired with donate_argnums on the jit wrapper
        # so XLA does NOT insert a defensive copy of the slab.
        input_output_aliases={0: 0},
    )(x2d, p2d)

    return out2d.reshape(N, C, H, W)


# Donate x so the in-place alias is real (no hidden HBM copy). NOTE: callers
# must not reuse x_nchw after the call.
residual_forward = jax.jit(_residual_forward, donate_argnums=(0,))


if __name__ == "__main__":
    # --- Small module-consistent shape --------------------------------------
    key = jax.random.PRNGKey(0)
    N, C, H, W = 2, 4, 16, 16

    kx, kw, kb = jax.random.split(key, 3)
    x = jax.random.normal(kx, (N, C, H, W), dtype=jnp.float32)
    # Deterministic fn parameters (per-channel affine for the example fn).
    w = jax.random.normal(kw, (C,), dtype=jnp.float32)
    b = jax.random.normal(kb, (C,), dtype=jnp.float32)

    # Compute the reference BEFORE calling the kernel: x is donated.
    ref = jnp.tanh(x * w[None, :, None, None] + b[None, :, None, None]) + x
    ref = jax.block_until_ready(ref)

    out = residual_forward(x, w, b)
    out = jax.block_until_ready(out)
    assert out.shape == ref.shape and out.dtype == ref.dtype
    assert jnp.allclose(out, ref, atol=1e-5, rtol=1e-5)

    # --- Larger shape: multi-tile pipelined grid, f32 then bf16 I/O ---------
    N2, C2, H2, W2 = 8, 64, 32, 64   # R=512, L=2048
    kx2, kw2, kb2 = jax.random.split(jax.random.PRNGKey(1), 3)
    x2 = jax.random.normal(kx2, (N2, C2, H2, W2), dtype=jnp.float32)
    w2 = jax.random.normal(kw2, (C2,), dtype=jnp.float32)
    b2 = jax.random.normal(kb2, (C2,), dtype=jnp.float32)

    # bf16 copies + both references computed before any donation.
    x2_bf = x2.astype(jnp.bfloat16)
    x2_bf_f32 = x2_bf.astype(jnp.float32)
    ref2 = jnp.tanh(x2 * w2[None, :, None, None] + b2[None, :, None, None]) + x2
    ref2_bf = (jnp.tanh(x2_bf_f32 * w2[None, :, None, None]
                        + b2[None, :, None, None]) + x2_bf_f32)
    ref2 = jax.block_until_ready(ref2)
    ref2_bf = jax.block_until_ready(ref2_bf)

    out2 = jax.block_until_ready(residual_forward(x2, w2, b2))
    assert out2.shape == ref2.shape and out2.dtype == ref2.dtype
    assert jnp.allclose(out2, ref2, atol=1e-5, rtol=1e-5)

    # bf16 I/O path: stream bf16, compute f32 in-kernel, store bf16.
    out2_bf = jax.block_until_ready(residual_forward(x2_bf, w2, b2))
    assert out2_bf.shape == x2_bf.shape and out2_bf.dtype == jnp.bfloat16
    assert jnp.allclose(out2_bf.astype(jnp.float32), ref2_bf,
                        atol=2e-2, rtol=2e-2)

    print("KERNEL_OK")
</pallas_src>

<mosaic_0001>
module attributes {stable_mosaic.version = 11 : i64} {
  func.func @_residual_kernel(%arg0: i32, %arg1: i32, %arg2: memref<8x256xf32, #tpu.memory_space<vmem>>, %arg3: memref<8x2xf32, #tpu.memory_space<vmem>>, %arg4: memref<8x256xf32, #tpu.memory_space<vmem>>) attributes {dimension_semantics = [#tpu.dimension_semantics<parallel>, #tpu.dimension_semantics<parallel>], iteration_bounds = array<i64: 1, 1>, scalar_prefetch = 0 : i64, scratch_operands = 0 : i64, tpu.core_type = #tpu.core_type<tc>, window_params = [{transform_indices = @transform_0, window_bounds = array<i64: 8, 256>}, {transform_indices = @transform_1, window_bounds = array<i64: 8, 2>}, {transform_indices = @transform_2, window_bounds = array<i64: 8, 256>}]} {
    %c0 = arith.constant 0 : index
    %c0_0 = arith.constant 0 : index
    %0 = vector.load %arg2[%c0, %c0_0] : memref<8x256xf32, #tpu.memory_space<vmem>>, vector<8x256xf32>
    %c0_1 = arith.constant 0 : index
    %c0_2 = arith.constant 0 : index
    %1 = vector.load %arg3[%c0_1, %c0_2] : memref<8x2xf32, #tpu.memory_space<vmem>>, vector<8x2xf32>
    %2 = vector.extract_strided_slice %1 {offsets = [0, 0], sizes = [8, 1], strides = [1, 1]} : vector<8x2xf32> to vector<8x1xf32>
    %3 = vector.extract_strided_slice %1 {offsets = [0, 1], sizes = [8, 1], strides = [1, 1]} : vector<8x2xf32> to vector<8x1xf32>
    %4 = vector.broadcast %2 : vector<8x1xf32> to vector<8x256xf32>
    %5 = arith.mulf %0, %4 : vector<8x256xf32>
    %6 = vector.broadcast %3 : vector<8x1xf32> to vector<8x256xf32>
    %7 = arith.addf %5, %6 : vector<8x256xf32>
    %8 = math.tanh %7 : vector<8x256xf32>
    %9 = arith.addf %8, %0 : vector<8x256xf32>
    %c0_3 = arith.constant 0 : index
    %c0_4 = arith.constant 0 : index
    %10 = vector.load %arg4[%c0_3, %c0_4] : memref<8x256xf32, #tpu.memory_space<vmem>>, vector<8x256xf32>
    tpu.vector_store %arg4[%c0_3, %c0_4], %9 {strides = array<i32>} : memref<8x256xf32, #tpu.memory_space<vmem>>, vector<8x256xf32>,
    return
  }
  func.func @transform_0(%arg0: i32, %arg1: i32) -> (i32, i32) {
    %c0_i32 = arith.constant 0 : i32
    return %arg0, %arg1 : i32, i32
  }
  func.func @transform_1(%arg0: i32, %arg1: i32) -> (i32, i32) {
    %c0_i32 = arith.constant 0 : i32
    %c0_i32_0 = arith.constant 0 : i32
    return %arg0, %c0_i32 : i32, i32
  }
  func.func @transform_2(%arg0: i32, %arg1: i32) -> (i32, i32) {
    %c0_i32 = arith.constant 0 : i32
    return %arg0, %arg1 : i32, i32
  }
}

</mosaic_0001>

<bundles_post_ra>
// kernel: _residual_forward.1
= control target key start
LH: loop header
LB: loop body
LE: loop exit
PB: predicated region body
PF: predicated region fallthrough
CT: control target
= control target key end

     0   :  { %v45_v0 = vmov 0   ;;  %v46_v2 = vmov 1   ;;  %s77_s1 = inlined_call_operand.vmem [shape: f32[8,2], index: 1, kind: input, shape index: {}]   ;;  %s78_s0 = inlined_call_operand.vmem [shape: f32[8,256], index: 0, kind: input, shape index: {}, may-alias: {0,2}]   ;;  %s79_s2 = inlined_call_operand.vmem [shape: f32[8,256], index: 2, kind: output, shape index: {}, may-alias: {0,2}]  }
   0x1   :  { %39 = vset.pattern.permute.xlu0 %v45_v0  ;;  %v13_v1 = vld [vmem:[%s77_s1] sm:$0xff]  ;;  %v12_v5 = vld [vmem:[%s78_s0 + $0x8] sm:$0xff] }
   0x2   :  { %16 = vperm.xlu0 %39, %v13_v1   ;;  %v11_v4 = vld [vmem:[%s78_s0] sm:$0xff] }
   0x6   :  { %40 = vset.pattern.permute.xlu0 %v46_v2 }
   0x7   :  { %22 = vperm.xlu0 %40, %v13_v1  }
  0x81   :  { %v17_v3 = vpop.permute.xlu0 %16 }
  0x82   :  { %v19_v6 = vmul.f32 %v17_v3, %v11_v4  ;;  %v20_v7 = vmul.f32 %v17_v3, %v12_v5 }
  0x86   :  { %v23_v8 = vpop.permute.xlu0 %22 }
  0x87   :  { %v25_v9 = vadd.f32 %v23_v8, %v19_v6  ;;  %v26_v10 = vadd.f32 %v23_v8, %v20_v7 }
  0x89   :  { %41 = vtanh.f32 %v25_v9 }
  0x8a   :  { %43 = vtanh.f32 %v26_v10 }
  0x93   :  { %v42_v11 = vpop.eup %41 }
  0x94   :  { %v44_v12 = vpop.eup %43  ;;  %v29_v13 = vadd.f32 %v42_v11, %v11_v4 }
  0x95   :  { %v30_v14 = vadd.f32 %v44_v12, %v12_v5 }
  0x96   :  { %31 = vst [vmem:[%s79_s2] sm:$0xff] %v29_v13 }
  0x97   :  { %32 = vst [vmem:[%s79_s2 + $0x8] sm:$0xff] %v30_v14 }

</bundles_post_ra>
